<compile_context>
chip_gen: v7x
topology: tpu7x:2x2x1
jax: 0.10.0
libtpu: 0.0.40
codegen_flags: <defaults>
</compile_context>

<pallas_src>
import math
import functools

import jax
import jax.numpy as jnp
from jax.experimental import pallas as pl
from jax.experimental.pallas import tpu as pltpu

_MIB = 1024 * 1024


def _round_up(x, m):
    return ((x + m - 1) // m) * m


def _vmem_capacity_bytes():
    # Generation-aware physical VMEM (v5e/v6e: 128 MiB, v7x: 64 MiB per TC).
    try:
        return int(pltpu.get_tpu_info().vmem_capacity_bytes)
    except Exception:
        return 64 * _MIB  # conservative (v7x-sized) fallback


def _hl_gauss_loss_kernel(logits_ref, target_ref, edges_ref, partial_ref, *,
                          eps, inv_sigma_sqrt_two, min_value, max_value,
                          clamp_to_range, batch, tb, steps, need_mask):
    c = pl.program_id(0)   # TensorCore-parallel axis
    i = pl.program_id(1)   # sequential reduction axis

    @pl.when(i == 0)
    def _():
        partial_ref[...] = jnp.zeros_like(partial_ref)

    logits = logits_ref[...].astype(jnp.float32)       # (TB, NB)
    target = target_ref[...].astype(jnp.float32)       # (TB, 1)
    if clamp_to_range:
        target = jnp.clip(target, min_value, max_value)
    edges = edges_ref[...]                             # (1, NB+1), pre-scaled by 1/(sigma*sqrt(2))

    # HL-Gauss soft target distribution: erf once per (shared) bin edge.
    t_scaled = target * inv_sigma_sqrt_two             # (TB, 1)
    edge_cdf = jax.lax.erf(edges - t_scaled)           # (TB, NB+1)
    # TODO(synk): the adjacent-edge difference could use one pltpu.roll on a
    # lane-padded edge vector instead of two shifted-slice temporaries (minor XLU win).
    bin_probs = edge_cdf[:, 1:] - edge_cdf[:, :-1]     # (TB, NB)
    z = edge_cdf[:, -1:] - edge_cdf[:, :1]             # (TB, 1): min/max_value ARE the outer edges
    inv_z = 1.0 / jnp.maximum(z, eps)                  # exact divide, (TB, 1) only

    # Soft-target cross entropy; target_probs never materialized:
    #   -sum(tp*(shifted - lse)) = inv_z*(z*lse - sum(bin_probs*shifted))
    # (sum(bin_probs) == z exactly by telescoping; eps-clamp semantics preserved.)
    m = jnp.max(logits, axis=-1, keepdims=True)
    shifted = logits - m
    lse = jnp.log(jnp.sum(jnp.exp(shifted), axis=-1, keepdims=True))       # (TB, 1)
    bp_dot_shift = jnp.sum(bin_probs * shifted, axis=-1, keepdims=True)    # (TB, 1)
    per_sample = inv_z * (z * lse - bp_dot_shift)                          # (TB, 1)

    if need_mask:
        t = c * steps + i           # global tile index
        n_full = batch // tb        # tiles guaranteed fully in-bounds

        @pl.when(t < n_full)
        def _():
            partial_ref[...] += jnp.sum(per_sample, axis=0, keepdims=True)

        @pl.when(t >= n_full)
        def _():
            # Last (partial) tile and clamped duplicate tail tiles: mask invalid rows.
            # (jnp.where selects 0.0 even if the garbage rows produced Inf/NaN.)
            row = t * tb + jax.lax.broadcasted_iota(jnp.int32, (tb, 1), 0)
            masked = jnp.where(row < batch, per_sample, 0.0)
            partial_ref[...] += jnp.sum(masked, axis=0, keepdims=True)
    else:
        partial_ref[...] += jnp.sum(per_sample, axis=0, keepdims=True)


def _hl_gauss_pred_kernel(logits_ref, centers_ref, pred_ref):
    # transform_from_logits: softmax(logits) @ centers, probs never materialized.
    # TODO(synk): if profiling ever shows this path XLU/VALU-bound (not HBM-streaming),
    # fuse num/den into one MXU matmul against a constant (NB,128) [centers|ones] matrix
    # and/or emit lane-dense (1, TB) output blocks; kept on the VPU for small NB.
    logits = logits_ref[...].astype(jnp.float32)       # (TB, NB)
    centers = centers_ref[...]                         # (1, NB)
    m = jnp.max(logits, axis=-1, keepdims=True)
    e = jnp.exp(logits - m)
    num = jnp.sum(e * centers, axis=-1, keepdims=True)           # (TB, 1)
    den = jnp.sum(e, axis=-1, keepdims=True)                     # (TB, 1)
    pred_ref[...] = num / den                                    # exact, (TB, 1) only


class HLGaussLossFromRunningStats:
    """JAX/Pallas port of hl_gauss_pytorch.HLGaussLossFromRunningStats forward."""
    # TODO(synk): the stateful running-stats update (training branch) mutates
    # host-side buffers in PyTorch; only the frozen-stats forward is kernelized.
    # TODO(synk): the `logits.shape == target.shape` (transform_to_logprobs) branch
    # and reductions other than 'mean' are not implemented.
    # TODO(synk): lane packing for small num_bins (k=128//NB samples per vreg row plus
    # a segmented MXU reduce) not applied; only worthwhile if the loss kernel turns out
    # compute-bound rather than HBM-bound after the larger tiling.

    def __init__(self, num_bins, sigma_to_bin_ratio=2.0, std_dev_range=3,
                 clamp_to_range=False, eps=1e-10):
        assert num_bins >= std_dev_range * 2
        running_mean, running_std = 100.0, 1.0   # RunningMeanVariance initial state
        self.num_bins = num_bins
        self.clamp_to_range = clamp_to_range
        self.eps = eps
        self.min_value = running_mean - running_std * std_dev_range
        self.max_value = running_mean + running_std * std_dev_range
        support = jnp.linspace(self.min_value, self.max_value, num_bins + 1,
                               dtype=jnp.float32)
        mean_bin_size = float(jnp.mean(support[1:] - support[:-1]))
        sigma = sigma_to_bin_ratio * mean_bin_size
        self.sigma_sqrt_two = math.sqrt(2.0) * sigma
        self.inv_sigma_sqrt_two = 1.0 / self.sigma_sqrt_two
        # Pre-scale edges host-side so the in-kernel erf argument is one subtract.
        self.scaled_edges = (support * self.inv_sigma_sqrt_two).reshape(1, num_bins + 1)
        self.centers = ((support[:-1] + support[1:]) * 0.5).reshape(1, num_bins)

        # Generation-aware VMEM budget: ~40% of physical, capped at 48 MiB
        # (v7x: ~25 MiB of its 64 MiB; v5e/v6e: 48 MiB of 128 MiB — above their
        # 16/32 MiB scoped defaults, hence vmem_limit_bytes is passed explicitly).
        self.vmem_budget = int(min((_vmem_capacity_bytes() * 2) // 5, 48 * _MIB))

    def _tile_rows(self, batch):
        nb = self.num_bins
        # Steady-state f32 bytes per tile row: double-buffered logits+target blocks
        # plus ~5 expression temporaries of width ~nb, with 2x headroom for Mosaic
        # scratch.  Large tiles amortize the ~0.35 us per-grid-step overhead against
        # the block DMA (for nb=32 this lands at TB ~14k-16k, i.e. ~2 MiB blocks).
        per_row = 4 * 7 * (nb + 1) * 2
        tb = (self.vmem_budget // per_row) // 8 * 8
        tb = max(8, min(tb, 16384))
        return min(tb, _round_up(batch, 8))

    def __call__(self, logits, target=None, block_rows=None):
        assert logits.ndim == 2 and logits.shape[-1] == self.num_bins
        batch = logits.shape[0]
        tb = block_rows if block_rows is not None else self._tile_rows(batch)
        n_tiles = pl.cdiv(batch, tb)

        if target is None:
            # Prediction path: transform_from_logits.
            pred = pl.pallas_call(
                _hl_gauss_pred_kernel,
                grid=(n_tiles,),
                in_specs=[
                    pl.BlockSpec((tb, self.num_bins), lambda i: (i, 0)),
                    pl.BlockSpec((1, self.num_bins), lambda i: (0, 0)),
                ],
                out_specs=pl.BlockSpec((tb, 1), lambda i: (i, 0)),
                out_shape=jax.ShapeDtypeStruct((batch, 1), jnp.float32),
                compiler_params=pltpu.CompilerParams(
                    dimension_semantics=("parallel",),
                    vmem_limit_bytes=self.vmem_budget),
            )(logits, self.centers)
            return pred[:, 0]

        target2d = jnp.reshape(target, (batch, 1))

        # Split the sequential loss reduction across TensorCores (2 on v7x; harmless
        # serialization on v5e/v6e).  Each core owns its own resident (1,1,1) partial
        # block; the wrapper sums the partials and normalizes by batch.
        num_parallel = 2 if n_tiles >= 2 else 1
        steps = pl.cdiv(n_tiles, num_parallel)
        need_mask = (batch % tb != 0) or (num_parallel * steps != n_tiles)

        if num_parallel * steps == n_tiles:
            def tile_idx(c, i):
                return c * steps + i
        else:
            def tile_idx(c, i):
                # Clamp the duplicate tail tile of the second core; its rows are
                # masked out inside the kernel.
                return jnp.minimum(c * steps + i, n_tiles - 1)

        logits_spec = pl.BlockSpec((tb, self.num_bins),
                                   lambda c, i: (tile_idx(c, i), 0))
        target_spec = pl.BlockSpec((tb, 1), lambda c, i: (tile_idx(c, i), 0))
        edges_spec = pl.BlockSpec((1, self.num_bins + 1), lambda c, i: (0, 0))

        kernel = functools.partial(
            _hl_gauss_loss_kernel,
            eps=self.eps,
            inv_sigma_sqrt_two=self.inv_sigma_sqrt_two,
            min_value=self.min_value,
            max_value=self.max_value,
            clamp_to_range=self.clamp_to_range,
            batch=batch,
            tb=tb,
            steps=steps,
            need_mask=need_mask,
        )
        partials = pl.pallas_call(
            kernel,
            grid=(num_parallel, steps),
            in_specs=[logits_spec, target_spec, edges_spec],
            out_specs=pl.BlockSpec((1, 1, 1), lambda c, i: (c, 0, 0)),
            out_shape=jax.ShapeDtypeStruct((num_parallel, 1, 1), jnp.float32),
            compiler_params=pltpu.CompilerParams(
                dimension_semantics=("parallel", "arbitrary"),
                vmem_limit_bytes=self.vmem_budget),
        )(logits, target2d, self.scaled_edges)
        return jnp.sum(partials) / batch


def _reference_loss(mod, logits, target):
    support = jnp.linspace(mod.min_value, mod.max_value, mod.num_bins + 1,
                           dtype=jnp.float32)
    cdf = jax.scipy.special.erf(
        (support[None, :] - target[:, None]) / mod.sigma_sqrt_two)
    z = cdf[:, -1] - cdf[:, 0]
    bin_probs = cdf[:, 1:] - cdf[:, :-1]
    tp = bin_probs / jnp.maximum(z, mod.eps)[:, None]
    logp = jax.nn.log_softmax(logits, axis=-1)
    return jnp.mean(-jnp.sum(tp * logp, axis=-1))


if __name__ == "__main__":
    key = jax.random.PRNGKey(0)
    k1, k2 = jax.random.split(key)
    batch, num_bins = 20, 32

    module = HLGaussLossFromRunningStats(num_bins=num_bins)

    logits = jax.random.normal(k1, (batch, num_bins), dtype=jnp.float32)
    target = 100.0 + jax.random.normal(k2, (batch,), dtype=jnp.float32)

    # small tiles: exercises the 2-way core split, multi-tile accumulation,
    # the clamped duplicate tail tile and the partial-tile row mask
    loss = module(logits, target, block_rows=8)
    jax.block_until_ready(loss)

    # prediction path (forward without target -> transform_from_logits)
    pred = module(logits, block_rows=8)
    jax.block_until_ready(pred)

    # default (auto-sized, single-tile) tiling path as well
    loss_auto = module(logits, target)
    jax.block_until_ready(loss_auto)

    # sanity checks against a pure-JAX reference of the PyTorch semantics
    ref_loss = _reference_loss(module, logits, target)
    assert jnp.allclose(loss, ref_loss, rtol=1e-4, atol=1e-4), (loss, ref_loss)
    assert jnp.allclose(loss_auto, ref_loss, rtol=1e-4, atol=1e-4), (loss_auto, ref_loss)
    ref_pred = jnp.sum(jax.nn.softmax(logits, axis=-1) * module.centers[0], axis=-1)
    assert jnp.allclose(pred, ref_pred, rtol=1e-4, atol=1e-4), (pred, ref_pred)

    print("KERNEL_OK")
</pallas_src>

<mosaic_0001>
module attributes {stable_mosaic.version = 11 : i64} {
  func.func @_hl_gauss_loss_kernel(%arg0: i32, %arg1: i32, %arg2: memref<8x32xf32, #tpu.memory_space<vmem>>, %arg3: memref<8x1xf32, #tpu.memory_space<vmem>>, %arg4: memref<1x33xf32, #tpu.memory_space<vmem>>, %arg5: memref<1x1x1xf32, #tpu.memory_space<vmem>>) attributes {dimension_semantics = [#tpu.dimension_semantics<parallel>, #tpu.dimension_semantics<arbitrary>], iteration_bounds = array<i64: 2, 2>, scalar_prefetch = 0 : i64, scratch_operands = 0 : i64, tpu.core_type = #tpu.core_type<tc>, window_params = [{transform_indices = @transform_0, window_bounds = array<i64: 8, 32>}, {transform_indices = @transform_1, window_bounds = array<i64: 8, 1>}, {pipeline_mode = #tpu.pipeline_mode<synchronous>, transform_indices = @transform_2, window_bounds = array<i64: 1, 33>}, {transform_indices = @transform_3, window_bounds = array<i64: 1, 1, 1>}]} {
    %c0_i32 = arith.constant 0 : i32
    %0 = arith.cmpi eq, %arg1, %c0_i32 : i32
    %1 = arith.extui %0 : i1 to i32
    %c0_i32_0 = arith.constant 0 : i32
    %2 = arith.cmpi ne, %1, %c0_i32_0 : i32
    scf.if %2 {
      %cst_15 = arith.constant 0.000000e+00 : f32
      %44 = vector.broadcast %cst_15 : f32 to vector<1x1x1xf32>
      %c0_16 = arith.constant 0 : index
      %c0_17 = arith.constant 0 : index
      %c0_18 = arith.constant 0 : index
      %45 = vector.load %arg5[%c0_16, %c0_17, %c0_18] : memref<1x1x1xf32, #tpu.memory_space<vmem>>, vector<1x1x1xf32>
      tpu.vector_store %arg5[%c0_16, %c0_17, %c0_18], %44 {strides = array<i32>} : memref<1x1x1xf32, #tpu.memory_space<vmem>>, vector<1x1x1xf32>,
    } else {
    }
    %c0 = arith.constant 0 : index
    %c0_1 = arith.constant 0 : index
    %3 = vector.load %arg2[%c0, %c0_1] : memref<8x32xf32, #tpu.memory_space<vmem>>, vector<8x32xf32>
    %c0_2 = arith.constant 0 : index
    %c0_3 = arith.constant 0 : index
    %4 = vector.load %arg3[%c0_2, %c0_3] : memref<8x1xf32, #tpu.memory_space<vmem>>, vector<8x1xf32>
    %c0_4 = arith.constant 0 : index
    %c0_5 = arith.constant 0 : index
    %5 = vector.load %arg4[%c0_4, %c0_5] : memref<1x33xf32, #tpu.memory_space<vmem>>, vector<1x33xf32>
    %cst = arith.constant 1.88561809 : f32
    %6 = vector.broadcast %cst : f32 to vector<8x1xf32>
    %7 = arith.mulf %4, %6 : vector<8x1xf32>
    %8 = vector.broadcast %5 : vector<1x33xf32> to vector<8x33xf32>
    %9 = vector.broadcast %7 : vector<8x1xf32> to vector<8x33xf32>
    %10 = arith.subf %8, %9 : vector<8x33xf32>
    %11 = math.erf %10 : vector<8x33xf32>
    %12 = vector.extract_strided_slice %11 {offsets = [0, 1], sizes = [8, 32], strides = [1, 1]} : vector<8x33xf32> to vector<8x32xf32>
    %13 = vector.extract_strided_slice %11 {offsets = [0, 0], sizes = [8, 32], strides = [1, 1]} : vector<8x33xf32> to vector<8x32xf32>
    %14 = arith.subf %12, %13 : vector<8x32xf32>
    %15 = vector.extract_strided_slice %11 {offsets = [0, 32], sizes = [8, 1], strides = [1, 1]} : vector<8x33xf32> to vector<8x1xf32>
    %16 = vector.extract_strided_slice %11 {offsets = [0, 0], sizes = [8, 1], strides = [1, 1]} : vector<8x33xf32> to vector<8x1xf32>
    %17 = arith.subf %15, %16 : vector<8x1xf32>
    %cst_6 = arith.constant 1.000000e-10 : f32
    %18 = vector.broadcast %cst_6 : f32 to vector<8x1xf32>
    %19 = arith.maximumf %17, %18 : vector<8x1xf32>
    %cst_7 = arith.constant 1.000000e+00 : f32
    %20 = vector.broadcast %cst_7 : f32 to vector<8x1xf32>
    %21 = arith.divf %20, %19 : vector<8x1xf32>
    %cst_8 = arith.constant dense<0xFF800000> : vector<8xf32>
    %22 = vector.multi_reduction <maximumf>, %3, %cst_8 [1] : vector<8x32xf32> to vector<8xf32>
    %23 = vector.shape_cast %22 : vector<8xf32> to vector<8x1xf32>
    %24 = vector.broadcast %23 : vector<8x1xf32> to vector<8x32xf32>
    %25 = arith.subf %3, %24 : vector<8x32xf32>
    %26 = math.exp %25 : vector<8x32xf32>
    %cst_9 = arith.constant dense<0.000000e+00> : vector<8xf32>
    %27 = vector.multi_reduction <add>, %26, %cst_9 [1] : vector<8x32xf32> to vector<8xf32>
    %28 = vector.shape_cast %27 : vector<8xf32> to vector<8x1xf32>
    %29 = math.log %28 : vector<8x1xf32>
    %30 = arith.mulf %14, %25 : vector<8x32xf32>
    %cst_10 = arith.constant dense<0.000000e+00> : vector<8xf32>
    %31 = vector.multi_reduction <add>, %30, %cst_10 [1] : vector<8x32xf32> to vector<8xf32>
    %32 = vector.shape_cast %31 : vector<8xf32> to vector<8x1xf32>
    %33 = arith.mulf %17, %29 : vector<8x1xf32>
    %34 = arith.subf %33, %32 : vector<8x1xf32>
    %35 = arith.mulf %21, %34 : vector<8x1xf32>
    %c2_i32 = arith.constant 2 : i32
    %36 = arith.muli %arg0, %c2_i32 : i32
    %37 = arith.addi %36, %arg1 : i32
    %c2_i32_11 = arith.constant 2 : i32
    %38 = arith.cmpi slt, %37, %c2_i32_11 : i32
    %39 = arith.extui %38 : i1 to i32
    %c0_i32_12 = arith.constant 0 : i32
    %40 = arith.cmpi ne, %39, %c0_i32_12 : i32
    scf.if %40 {
      %c0_15 = arith.constant 0 : index
      %c0_16 = arith.constant 0 : index
      %c0_17 = arith.constant 0 : index
      %44 = vector.load %arg5[%c0_15, %c0_16, %c0_17] : memref<1x1x1xf32, #tpu.memory_space<vmem>>, vector<1x1x1xf32>
      %cst_18 = arith.constant dense<0.000000e+00> : vector<1xf32>
      %45 = vector.multi_reduction <add>, %35, %cst_18 [0] : vector<8x1xf32> to vector<1xf32>
      %46 = vector.shape_cast %45 : vector<1xf32> to vector<1x1xf32>
      %47 = vector.shape_cast %46 : vector<1x1xf32> to vector<1x1x1xf32>
      %48 = arith.addf %44, %47 : vector<1x1x1xf32>
      %c0_19 = arith.constant 0 : index
      %c0_20 = arith.constant 0 : index
      %c0_21 = arith.constant 0 : index
      %49 = vector.load %arg5[%c0_19, %c0_20, %c0_21] : memref<1x1x1xf32, #tpu.memory_space<vmem>>, vector<1x1x1xf32>
      tpu.vector_store %arg5[%c0_19, %c0_20, %c0_21], %48 {strides = array<i32>} : memref<1x1x1xf32, #tpu.memory_space<vmem>>, vector<1x1x1xf32>,
    } else {
    }
    %c2_i32_13 = arith.constant 2 : i32
    %41 = arith.cmpi sge, %37, %c2_i32_13 : i32
    %42 = arith.extui %41 : i1 to i32
    %c0_i32_14 = arith.constant 0 : i32
    %43 = arith.cmpi ne, %42, %c0_i32_14 : i32
    scf.if %43 {
      %c8_i32 = arith.constant 8 : i32
      %44 = arith.muli %37, %c8_i32 : i32
      %45 = tpu.iota {dimensions = array<i32: 0>} : vector<8x1xi32>
      %46 = vector.broadcast %44 : i32 to vector<8x1xi32>
      %47 = arith.addi %46, %45 : vector<8x1xi32>
      %c20_i32 = arith.constant 20 : i32
      %48 = vector.broadcast %c20_i32 : i32 to vector<8x1xi32>
      %49 = arith.cmpi slt, %47, %48 : vector<8x1xi32>
      %cst_15 = arith.constant 0.000000e+00 : f32
      %50 = vector.broadcast %cst_15 : f32 to vector<8x1xf32>
      %51 = arith.select %49, %35, %50 : vector<8x1xi1>, vector<8x1xf32>
      %c0_16 = arith.constant 0 : index
      %c0_17 = arith.constant 0 : index
      %c0_18 = arith.constant 0 : index
      %52 = vector.load %arg5[%c0_16, %c0_17, %c0_18] : memref<1x1x1xf32, #tpu.memory_space<vmem>>, vector<1x1x1xf32>
      %cst_19 = arith.constant dense<0.000000e+00> : vector<1xf32>
      %53 = vector.multi_reduction <add>, %51, %cst_19 [0] : vector<8x1xf32> to vector<1xf32>
      %54 = vector.shape_cast %53 : vector<1xf32> to vector<1x1xf32>
      %55 = vector.shape_cast %54 : vector<1x1xf32> to vector<1x1x1xf32>
      %56 = arith.addf %52, %55 : vector<1x1x1xf32>
      %c0_20 = arith.constant 0 : index
      %c0_21 = arith.constant 0 : index
      %c0_22 = arith.constant 0 : index
      %57 = vector.load %arg5[%c0_20, %c0_21, %c0_22] : memref<1x1x1xf32, #tpu.memory_space<vmem>>, vector<1x1x1xf32>
      tpu.vector_store %arg5[%c0_20, %c0_21, %c0_22], %56 {strides = array<i32>} : memref<1x1x1xf32, #tpu.memory_space<vmem>>, vector<1x1x1xf32>,
    } else {
    }
    return
  }
  func.func @transform_0(%arg0: i32, %arg1: i32) -> (i32, i32) {
    %c2_i32 = arith.constant 2 : i32
    %0 = arith.muli %arg0, %c2_i32 : i32
    %1 = arith.addi %0, %arg1 : i32
    %c2_i32_0 = arith.constant 2 : i32
    %2 = arith.minsi %1, %c2_i32_0 : i32
    %c0_i32 = arith.constant 0 : i32
    %c0_i32_1 = arith.constant 0 : i32
    return %2, %c0_i32 : i32, i32
  }
  func.func @transform_1(%arg0: i32, %arg1: i32) -> (i32, i32) {
    %c2_i32 = arith.constant 2 : i32
    %0 = arith.muli %arg0, %c2_i32 : i32
    %1 = arith.addi %0, %arg1 : i32
    %c2_i32_0 = arith.constant 2 : i32
    %2 = arith.minsi %1, %c2_i32_0 : i32
    %c0_i32 = arith.constant 0 : i32
    %c0_i32_1 = arith.constant 0 : i32
    return %2, %c0_i32 : i32, i32
  }
  func.func @transform_2(%arg0: i32, %arg1: i32) -> (i32, i32) {
    %c0_i32 = arith.constant 0 : i32
    %c0_i32_0 = arith.constant 0 : i32
    %c0_i32_1 = arith.constant 0 : i32
    return %c0_i32, %c0_i32_0 : i32, i32
  }
  func.func @transform_3(%arg0: i32, %arg1: i32) -> (i32, i32, i32) {
    %c0_i32 = arith.constant 0 : i32
    %c0_i32_0 = arith.constant 0 : i32
    %c0_i32_1 = arith.constant 0 : i32
    return %arg0, %c0_i32, %c0_i32_0 : i32, i32, i32
  }
}

</mosaic_0001>

<bundles_post_ra>
// kernel: tpu_custom_call.1
= control target key start
LH: loop header
LB: loop body
LE: loop exit
PB: predicated region body
PF: predicated region fallthrough
CT: control target
= control target key end

     0   :  { %s612_s12 = smov 0   ;;  %s614_s13 = smov 0   ;;  %s691_s0 = inlined_call_operand.vmem [shape: f32[20,32], index: 0, kind: input, shape index: {}]   ;;  %s692_s1 = inlined_call_operand.vmem [shape: f32[20,1], index: 1, kind: input, shape index: {}]   ;;  %s693_s2 = inlined_call_operand.vmem [shape: f32[1,33], index: 2, kind: input, shape index: {}]   ;;  %s694_s3 = inlined_call_operand.vmem [shape: f32[2,1,1], index: 3, kind: output, shape index: {}]  }
   0x1   :  { %s616_s14 = smov 0   ;;  %s618_s15 = smov 0  }
   0x2   :  { %s620_s16 = smov 0  }
   0x3 LB: > { %s22_s17 = sadd.s32 1, %s573_s14  ;;  %s25_s18 = sadd.s32 1, %s577_s15  ;;  %s581_s16 = sphi %s620_s16, %s13_s16   ;;  %s577_s15 = sphi %s618_s15, %s698_s15   ;;  %s573_s14 = sphi %s616_s14, %s697_s14   ;;  %s569_s13 = sphi %s614_s13, %s696_s13   ;;  %s565_s12 = sphi %s612_s12, %s695_s12  }
   0x4   : > { %p23_p0 = scmp.ge.s32.totalorder %s22_s17, 2  ;;  %p466_p1 = scmp.ge.s32.totalorder %s581_s16, 1 }
   0x5   : > { %p189_p2 = scmp.lt.s32.totalorder %s581_s16, 5 }
   0x6   : > { %s700_s17 = smov (%p23_p0, %s22_s17), 0  ;;  %s702_s18 = smov (!%p23_p0, %s25_s18), %s577_s15 }
   0x7   : > { %p190_p3 = pnand %p466_p1, %p189_p2  ;;  %p27_p4 = scmp.ge.s32.totalorder %s702_s18, 2 }
   0x8   : > { %s467_s19 = sshll.u32 (!%p190_p3), %s569_s13, 1  ;;  %p246_p5 = scmp.lt.s32.totalorder (!%p190_p3), %s569_s13, 1 }
   0x9   : > { %s704_s18 = smov (%p27_p4, %s702_s18), 0  ;;  %193 = sbr.rel (%p190_p3) target bundleno = 875 (0x36b), region = 32 }
   0xa   : > { %s642_s20 = sadd.s32 (!%p190_p3), %s565_s12, %s467_s19  ;;  %p477_p7 = scmp.ne.s32.totalorder (!%p190_p3), %s565_s12, 0 }
   0xb   : > { %p224_p6 = scmp.lt.s32.totalorder (!%p190_p3), %s642_s20, 2 }
  0x10   : > { %s706_s13 = smov (!%p246_p5, %s569_s13), 1  ;;  %252 = sbr.rel (%p477_p7) target bundleno = 23 (0x17), region = 36 }
  0x11   : > { %s225_s21 = scalar_select %p224_p6, %s642_s20, 2 }
  0x12   : > { %s651_s24 = scalar_lea.vmem %s694_s3, %s706_s13  ;;  %vm253_vm0 = vcmask (!%p477_p7), 0   ;;  %v583_v0 = vmov (!%p477_p7), 0.0  }
  0x13   : > { %s708_s21 = smov (!%p224_p6, %s225_s21), 2  ;;  %254 = vst.msk [vmem:[%s651_s24] sm:$0x1] (!%p477_p7), %vm253_vm0, %v583_v0 }
  0x14   : > { %s471_s25 = sshll.u32 %s708_s21, 3 }
  0x15   : > { %s229_s28 = scalar_lea.vmem %s691_s0, %s471_s25  ;;  %s241_s4 = scalar_lea.vmem %s692_s1, %s471_s25 }
  0x17 PF: > { %v256_v1 = vld [vmem:[%s241_s4] sm:$0xff]  ;;  %v584_v2 = vmov 0   ;;  %vm284_vm1 = vcmask 261120   ;;  %s585_s7 = smov 1   ;;  %s586_s8 = smov 127  }
  0x18   : > { %534 = vset.pattern.permute.xlu0 %v584_v2  ;;  %v258_v3 = vmul.f32 1.8856181, %v256_v1  ;;  %v255_v4 = vld [vmem:[%s229_s28] sm:$0xff]  ;;  %s587_s9 = smov 32   ;;  %p480_p8 = scmp.ge.s32.totalorder %s642_s20, 2 }
  0x19   : > { %v285_v5 = vsel %vm284_vm1, %v255_v4, -inf  ;;  %v478_v6 = vld [vmem:[%s693_s2] ss:$0 sm:$0xff]  ;;  %vm318_vm2 = vcmask (!%p480_p8), 269568   ;;  %v588_v34 = vmov (!%p480_p8), 1966171168   ;;  %v330_v36 = vlaneseq (!%p480_p8) }
  0x1a   : > { %267 = vperm.xlu0 %534, %v258_v3   ;;  %v328_v35 = vunpack.c.l.s4 (!%p480_p8), %v588_v34  ;;  %s589_s10 = smov (!%p480_p8), 96   ;;  %v317_v47 = vld [vmem:[%s651_s24] sm:$0x1] (!%p480_p8)  ;;  %vm345_vm3 = vcmask (!%p480_p8), 0  }
  0x1b   : > { %v331_v40 = vshrl.u32 (!%p480_p8), %v330_v36, 7 }
  0x1c   : > { %v329_v39 = vunpack.c.0.s8 (!%p480_p8), %v328_v35 }
  0x1e   : > { %v332_v43 = vsub.s32 (!%p480_p8), %v329_v39, %v331_v40 }
  0x39   : > { %286 = vmax.xlane.f32.xlu0 %v285_v5 }
  0x99   : > { %v268_v7 = vpop.permute.xlu0 %267 }
  0x9a   : > { %v270_v8 = vsub.f32 %v478_v6, %v268_v7 }
  0x9c   : > { %535 = verf.f32 %v270_v8 }
  0xa6   : > { %v536_v9 = vpop.eup %535 }
  0xa7   : > { %273 = vrot.lane.b32.xlu1 %v536_v9, %s585_s7 }
  0xc6   : > { %v287_v10 = vpop.xlane.xlu0 %286 }
  0xc7   : > { %v288_v11 = vsub.f32 %v255_v4, %v287_v10 }
  0xc9   : > { %297 = vrot.lane.b32.xlu1 %v288_v11, %s585_s7  ;;  %v289_v16 = vmul.f32 1.442695, %v288_v11 }
  0xcb   : > { %537 = vpow2.f32 %v289_v16 }
  0xd5   : > { %v538_v17 = vpop.eup %537 }
  0xd6   : > { %v291_v18 = vsel %vm284_vm1, %v538_v17, 0.0 }
 0x119   : > { %v274_v12 = vpop.permute.xlu1 %273 }
 0x11a   : > { %v276_v13 = vsub.f32 %v536_v9, %v274_v12 }
 0x13b   : > { %v298_v14 = vpop.permute.xlu1 %297 }
 0x13c   : > { %v300_v15 = vmul.f32 %v298_v14, %v276_v13 }
 0x13e   : > { %302 = vrot.lane.b32.xlu1 %v300_v15, %s586_s8 }
 0x162   : > { %292 = vadd.xlane.f32.xlu1 %v291_v18 }
 0x1b0   : > { %v303_v19 = vpop.permute.xlu1 %302 }
 0x1b1   : > { %v305_v20 = vsel %vm284_vm1, %v303_v19, 0.0 }
 0x1b2   : > { %306 = vadd.xlane.f32.xlu0 %v305_v20 }
 0x1c8   : > { %277 = vrot.lane.b32.xlu0 %v536_v9, %s587_s9 }
 0x1ef   : > { %v293_v21 = vpop.xlane.xlu1 %292 }
 0x1f0   : > { %539 = vlog2.f32 %v293_v21 }
 0x1fa   : > { %v540_v26 = vpop.eup %539 }
 0x1fb   : > { %v295_v27 = vmul.f32 0.6931472, %v540_v26 }
 0x23f   : > { %v307_v22 = vpop.xlane.xlu0 %306 }
 0x243   : > { %v278_v23 = vpop.permute.xlu0 %277 }
 0x244   : > { %v280_v24 = vsub.f32 %v536_v9, %v278_v23 }
 0x246   : > { %v281_v25 = vmax.f32 %v280_v24, 1e-10  ;;  %v308_v28 = vmul.f32 %v295_v27, %v280_v24 }
 0x248   : > { %541 = vrcp.f32 %v281_v25  ;;  %v309_v29 = vsub.f32 %v308_v28, %v307_v22 }
 0x24d   : > { %316 = sbr.rel (%p480_p8) target bundleno = 732 (0x2dc), region = 40 }
 0x252   : > { %v542_v30 = vpop.eup %541 }
 0x253   : > { %v310_v31 = vmul.f32 %v542_v30, %v309_v29 }
 0x255   : > { %v319_v32 = vsel %vm318_vm2, %v310_v31, 0.0 }
 0x256   : > { %v320_v33 = vrot.slane %v319_v32, 4 }
 0x258   : > { %v321_v37 = vadd.f32 %v320_v33, %v319_v32 }
 0x25a   : > { %v322_v38 = vrot.slane %v321_v37, 2 }
 0x25c   : > { %v323_v41 = vadd.f32 %v322_v38, %v321_v37 }
 0x25e   : > { %v324_v42 = vrot.slane %v323_v41, 1 }
 0x260   : > { %v325_v44 = vadd.f32 %v324_v42, %v323_v41 }
 0x262   : > { %v333_v45 = vrot.slane %v325_v44, %v332_v43 }
 0x264   : > { %v340_v46 = vrot.slane %v333_v45, %v332_v43 }
 0x266   : > { %341 = vrot.lane.b32.xlu0 %v340_v46, %s589_s10 }
 0x2d8   : > { %v342_v48 = vpop.permute.xlu0 %341 }
 0x2d9   : > { %v344_v49 = vadd.f32 %v342_v48, %v317_v47 }
 0x2db   : > { %346 = vst.msk [vmem:[%s651_s24] sm:$0x1] %vm345_vm3, %v344_v49 }
 0x2dc PF: > { %350 = sbr.rel (%p224_p6) target bundleno = 875 (0x36b), region = 44  ;;  %s482_s11 = sshll.u32 (!%p224_p6), %s642_s20, 3  ;;  %v352_v50 = vlaneseq (!%p224_p6)  ;;  %vm359_vm4 = vcmask (!%p224_p6), 269568   ;;  %v590_v57 = vmov (!%p224_p6), 1966171168   ;;  %vm386_vm6 = vcmask (!%p224_p6), 0  }
 0x2dd   : > { %v354_v51 = vstv (!%p224_p6), %s482_s11  ;;  %v369_v58 = vunpack.c.l.s4 (!%p224_p6), %v590_v57  ;;  %s591_s12 = smov (!%p224_p6), 96  }
 0x2de   : > { %v353_v52 = vshrl.u32 (!%p224_p6), %v352_v50, 7 }
 0x2df   : > { %v370_v61 = vunpack.c.0.s8 (!%p224_p6), %v369_v58 }
 0x2e0   : > { %v355_v53 = vadd.s32 (!%p224_p6), %v354_v51, %v353_v52 }
 0x2e1   : > { %v373_v0 = vsub.s32 (!%p224_p6), %v370_v61, %v353_v52 }
 0x2e2   : > { %vm356_vm5 = vcmp.lt.s32.totalorder (!%p224_p6), %v355_v53, 20  ;;  %v358_v4 = vld [vmem:[%s651_s24] sm:$0x1] (!%p224_p6) }
 0x2e3   : > { %v357_v54 = vsel %vm356_vm5, %v310_v31, 0.0 }
 0x2e4   : > { %v360_v55 = vsel %vm359_vm4, %v357_v54, 0.0 }
 0x2e5   : > { %v361_v56 = vrot.slane %v360_v55, 4 }
 0x2e7   : > { %v362_v59 = vadd.f32 %v361_v56, %v360_v55 }
 0x2e9   : > { %v363_v60 = vrot.slane %v362_v59, 2 }
 0x2eb   : > { %v364_v62 = vadd.f32 %v363_v60, %v362_v59 }
 0x2ed   : > { %v365_v63 = vrot.slane %v364_v62, 1 }
 0x2ef   : > { %v366_v1 = vadd.f32 %v365_v63, %v364_v62 }
 0x2f1   : > { %v374_v2 = vrot.slane %v366_v1, %v373_v0 }
 0x2f3   : > { %v381_v3 = vrot.slane %v374_v2, %v373_v0 }
 0x2f5   : > { %382 = vrot.lane.b32.xlu0 %v381_v3, %s591_s12 }
 0x367   : > { %v383_v5 = vpop.permute.xlu0 %382 }
 0x368   : > { %v385_v6 = vadd.f32 %v383_v5, %v358_v4 }
 0x36a   : > { %387 = vst.msk [vmem:[%s651_s24] sm:$0x1] %vm386_vm6, %v385_v6 }
 0x36b PF: > { %s13_s16 = sadd.s32 1, %s581_s16   ;;  %s695_s12 = smov %s573_s14 }
 0x36c   : > { %p10_p9 = scmp.ge.s32.totalorder %s13_s16, 6   ;;  %s696_s13 = smov %s577_s15 }
 0x36d   : > { %s697_s14 = smov %s700_s17  ;;  %s698_s15 = smov %s704_s18 }
 0x36e   :  { %12 = sbr.rel (!%p10_p9) target bundleno = 3 (0x3), region = 77 }

</bundles_post_ra>
